<compile_context>
chip_gen: v6e
topology: v6e:2x2x1
jax: 0.10.0
libtpu: 0.0.40
codegen_flags: <defaults>
</compile_context>

<pallas_src>
import jax
import jax.numpy as jnp
from jax import lax
from jax.experimental import pallas as pl
from jax.experimental.pallas import tpu as pltpu

EPS = 1e-5
NEG_SLOPE = 0.01  # nn.LeakyReLU() default


def _bn_act(y, gb):
    """Fused BatchNorm1d (batch stats) + LeakyReLU on an f32 [N, D] block."""
    mu = jnp.mean(y, axis=0, keepdims=True)
    var = jnp.mean((y - mu) * (y - mu), axis=0, keepdims=True)
    s = gb[0:1, :] * lax.rsqrt(var + EPS)      # gamma * rsqrt(var + eps)  -> EUP
    t = gb[1:2, :] - mu * s                    # beta - mu * s
    h = y * s + t                              # single FMA per element
    return jnp.maximum(h, NEG_SLOPE * h)       # LeakyReLU


def mlp_encoder_kernel(x_ref, w1_ref, gb1_ref, w2_ref, gb2_ref, o_ref):
    j = pl.program_id(0)

    @pl.when(j == 0)
    def _():
        o_ref[...] = jnp.zeros_like(o_ref)     # output block doubles as f32 accumulator

    # Layer 1 on this chunk of output features (bias folded out: BN mean-sub cancels it).
    # x is bf16, w1 chunk is bf16, accumulation in f32 on the MXU.
    y1 = jnp.dot(x_ref[...], w1_ref[...], preferred_element_type=jnp.float32)
    h1 = _bn_act(y1, gb1_ref[...])             # per-column stats -> chunk-safe

    # Layer 2 partial matmul over this chunk of the contraction (layer-1 feature) dim,
    # accumulated into the resident output block.
    o_ref[...] += jnp.dot(h1.astype(jnp.bfloat16), w2_ref[...],
                          preferred_element_type=jnp.float32)

    @pl.when(j == pl.num_programs(0) - 1)
    def _():
        h2 = _bn_act(o_ref[...], gb2_ref[...])
        o_ref[...] = jnp.maximum(h2, 0.0).astype(o_ref.dtype)   # final nn.ReLU()


def _pick_chunk(d0):
    """Chunk width for the layer-1 output dim: multiple of 128, else whole dim."""
    for c in (256, 128, 512):
        if d0 % c == 0:
            return c
    return d0


def _vmem_limit_bytes(n, in_dim, d0, d1, chunk):
    est = (
        2 * n * in_dim * 2            # x (double-buffered), bf16
        + 2 * in_dim * chunk * 2      # w1 chunk x2, bf16
        + 2 * chunk * d1 * 2          # w2 chunk x2, bf16
        + 2 * 8 * chunk * 4           # gb1 chunk x2 (padded to 8 sublanes), f32
        + 2 * 8 * d1 * 4              # gb2 x2, f32
        + 2 * n * d1 * 4              # output / accumulator x2, f32
        + 4 * n * chunk * 4           # in-body temporaries (y1/h1/etc.), f32
    )
    return int(min(max(2 * est + (1 << 20), 4 << 20), 64 << 20))


def mlp_encoder(feat, params):
    """feat: [N, in_dim]. params: dict with bf16 w1/w2 and packed f32 gb1/gb2."""
    n, in_dim = feat.shape
    w1, w2 = params["w1"], params["w2"]
    gb1, gb2 = params["gb1"], params["gb2"]
    d0, d1 = w1.shape[1], w2.shape[1]

    chunk = _pick_chunk(d0)
    n_chunks = d0 // chunk

    x_bf16 = feat.astype(jnp.bfloat16)

    flops = 2 * n * in_dim * d0 + 2 * n * d0 * d1 + 10 * n * (d0 + d1)
    bytes_accessed = (x_bf16.size * 2 + w1.size * 2 + w2.size * 2
                      + gb1.size * 4 + gb2.size * 4 + n * d1 * 4)

    return pl.pallas_call(
        mlp_encoder_kernel,
        out_shape=jax.ShapeDtypeStruct((n, d1), jnp.float32),
        grid_spec=pltpu.PrefetchScalarGridSpec(
            num_scalar_prefetch=0,
            grid=(n_chunks,),
            in_specs=[
                pl.BlockSpec((n, in_dim), lambda j: (0, 0)),      # x: resident
                pl.BlockSpec((in_dim, chunk), lambda j: (0, j)),  # w1: column chunks
                pl.BlockSpec((2, chunk), lambda j: (0, j)),       # [gamma; beta] layer 1
                pl.BlockSpec((chunk, d1), lambda j: (j, 0)),      # w2: row chunks
                pl.BlockSpec((2, d1), lambda j: (0, 0)),          # [gamma; beta] layer 2
            ],
            out_specs=pl.BlockSpec((n, d1), lambda j: (0, 0)),    # resident accumulator
        ),
        compiler_params=pltpu.CompilerParams(
            dimension_semantics=("arbitrary",),  # sequential: accumulates across chunks
            vmem_limit_bytes=_vmem_limit_bytes(n, in_dim, d0, d1, chunk),
        ),
        cost_estimate=pl.CostEstimate(
            flops=int(flops),
            transcendentals=int(d0 + d1),
            bytes_accessed=int(bytes_accessed),
        ),
    )(x_bf16, w1, gb1, w2, gb2)


def init_params(key, in_dim, out_dims=(512, 256)):
    k1, k2, k3, k4 = jax.random.split(key, 4)
    d0, d1 = out_dims
    lim1 = 1.0 / jnp.sqrt(jnp.float32(in_dim))
    lim2 = 1.0 / jnp.sqrt(jnp.float32(d0))
    return {
        # Weights stored bf16: halves HBM traffic; f32 accumulation happens in-kernel.
        "w1": jax.random.uniform(k1, (in_dim, d0), jnp.float32, -lim1, lim1
                                 ).astype(jnp.bfloat16),
        "w2": jax.random.uniform(k3, (d0, d1), jnp.float32, -lim2, lim2
                                 ).astype(jnp.bfloat16),
        # Linear biases: kept for module fidelity / the reference, but NOT passed to the
        # kernel -- BatchNorm's batch-mean subtraction cancels them exactly.
        "b1": jax.random.uniform(k2, (1, d0), jnp.float32, -lim1, lim1),
        "b2": jax.random.uniform(k4, (1, d1), jnp.float32, -lim2, lim2),
        # BatchNorm1d affine params packed as [gamma; beta] per layer (one DMA each).
        "gb1": jnp.concatenate([jnp.ones((1, d0), jnp.float32),
                                jnp.zeros((1, d0), jnp.float32)], axis=0),
        "gb2": jnp.concatenate([jnp.ones((1, d1), jnp.float32),
                                jnp.zeros((1, d1), jnp.float32)], axis=0),
    }


def mlp_encoder_ref(feat, p):
    """Pure-JAX reference mirroring the kernel's bf16-matmul / f32-elementwise policy.
    Keeps the Linear biases to verify dropping them in the kernel is a no-op."""
    def block(x, w, b, gb):
        h = jnp.dot(x.astype(jnp.bfloat16), w.astype(jnp.bfloat16),
                    preferred_element_type=jnp.float32) + b
        mu = h.mean(0, keepdims=True)
        var = ((h - mu) ** 2).mean(0, keepdims=True)
        h = (h - mu) * lax.rsqrt(var + EPS) * gb[0:1] + gb[1:2]
        return jnp.where(h > 0, h, NEG_SLOPE * h)
    h = block(feat, p["w1"], p["b1"], p["gb1"])
    h = block(h, p["w2"], p["b2"], p["gb2"])
    return jnp.maximum(h, 0.0)


if __name__ == "__main__":
    key = jax.random.PRNGKey(0)
    kx, kp = jax.random.split(key)

    N, IN_DIM = 8, 48
    OUT_DIMS = (512, 256)

    feat = jax.random.normal(kx, (N, IN_DIM), jnp.float32)
    params = init_params(kp, IN_DIM, OUT_DIMS)

    out = jax.block_until_ready(mlp_encoder(feat, params))
    ref = mlp_encoder_ref(feat, params)

    assert out.shape == (N, OUT_DIMS[1])
    err = float(jnp.max(jnp.abs(out - ref)))
    assert jnp.allclose(out, ref, atol=1e-2, rtol=1e-2), f"mismatch vs reference: {err}"

    print("KERNEL_OK")
</pallas_src>

<mosaic_0001>
module attributes {stable_mosaic.version = 11 : i64} {
  func.func @mlp_encoder_kernel(%arg0: i32, %arg1: memref<8x48xbf16, #tpu.memory_space<vmem>>, %arg2: memref<48x256xbf16, #tpu.memory_space<vmem>>, %arg3: memref<2x256xf32, #tpu.memory_space<vmem>>, %arg4: memref<256x256xbf16, #tpu.memory_space<vmem>>, %arg5: memref<2x256xf32, #tpu.memory_space<vmem>>, %arg6: memref<8x256xf32, #tpu.memory_space<vmem>>) attributes {dimension_semantics = [#tpu.dimension_semantics<arbitrary>], iteration_bounds = array<i64: 2>, scalar_prefetch = 0 : i64, scratch_operands = 0 : i64, tpu.core_type = #tpu.core_type<tc>, window_params = [{pipeline_mode = #tpu.pipeline_mode<synchronous>, transform_indices = @transform_0, window_bounds = array<i64: 8, 48>}, {transform_indices = @transform_1, window_bounds = array<i64: 48, 256>}, {transform_indices = @transform_2, window_bounds = array<i64: 2, 256>}, {transform_indices = @transform_3, window_bounds = array<i64: 256, 256>}, {pipeline_mode = #tpu.pipeline_mode<synchronous>, transform_indices = @transform_4, window_bounds = array<i64: 2, 256>}, {pipeline_mode = #tpu.pipeline_mode<synchronous>, transform_indices = @transform_5, window_bounds = array<i64: 8, 256>}]} {
    %c0_i32 = arith.constant 0 : i32
    %0 = arith.cmpi eq, %arg0, %c0_i32 : i32
    %1 = arith.extui %0 : i1 to i32
    %c0_i32_0 = arith.constant 0 : i32
    %2 = arith.cmpi ne, %1, %c0_i32_0 : i32
    scf.if %2 {
      %cst_20 = arith.constant 0.000000e+00 : f32
      %44 = vector.broadcast %cst_20 : f32 to vector<8x256xf32>
      %c0_21 = arith.constant 0 : index
      %c0_22 = arith.constant 0 : index
      %45 = vector.load %arg6[%c0_21, %c0_22] : memref<8x256xf32, #tpu.memory_space<vmem>>, vector<8x256xf32>
      tpu.vector_store %arg6[%c0_21, %c0_22], %44 {strides = array<i32>} : memref<8x256xf32, #tpu.memory_space<vmem>>, vector<8x256xf32>,
    } else {
    }
    %c0 = arith.constant 0 : index
    %c0_1 = arith.constant 0 : index
    %3 = vector.load %arg1[%c0, %c0_1] : memref<8x48xbf16, #tpu.memory_space<vmem>>, vector<8x48xbf16>
    %c0_2 = arith.constant 0 : index
    %c0_3 = arith.constant 0 : index
    %4 = vector.load %arg2[%c0_2, %c0_3] : memref<48x256xbf16, #tpu.memory_space<vmem>>, vector<48x256xbf16>
    %cst = arith.constant dense<0.000000e+00> : vector<8x256xf32>
    %5 = tpu.matmul %3, %4, %cst {dimension_numbers = #tpu.dot_dimension_numbers<[1], [0], [0], [1], [0, 0, 1, 1], [], []>} : vector<8x48xbf16>, vector<48x256xbf16>, vector<8x256xf32> -> vector<8x256xf32>
    %c0_4 = arith.constant 0 : index
    %c0_5 = arith.constant 0 : index
    %6 = vector.load %arg3[%c0_4, %c0_5] : memref<2x256xf32, #tpu.memory_space<vmem>>, vector<2x256xf32>
    %cst_6 = arith.constant dense<0.000000e+00> : vector<256xf32>
    %7 = vector.multi_reduction <add>, %5, %cst_6 [0] : vector<8x256xf32> to vector<256xf32>
    %8 = vector.shape_cast %7 : vector<256xf32> to vector<1x256xf32>
    %cst_7 = arith.constant 8.000000e+00 : f32
    %9 = vector.broadcast %cst_7 : f32 to vector<1x256xf32>
    %10 = arith.divf %8, %9 : vector<1x256xf32>
    %11 = vector.broadcast %10 : vector<1x256xf32> to vector<8x256xf32>
    %12 = arith.subf %5, %11 : vector<8x256xf32>
    %13 = vector.broadcast %10 : vector<1x256xf32> to vector<8x256xf32>
    %14 = arith.subf %5, %13 : vector<8x256xf32>
    %15 = arith.mulf %12, %14 : vector<8x256xf32>
    %cst_8 = arith.constant dense<0.000000e+00> : vector<256xf32>
    %16 = vector.multi_reduction <add>, %15, %cst_8 [0] : vector<8x256xf32> to vector<256xf32>
    %17 = vector.shape_cast %16 : vector<256xf32> to vector<1x256xf32>
    %cst_9 = arith.constant 8.000000e+00 : f32
    %18 = vector.broadcast %cst_9 : f32 to vector<1x256xf32>
    %19 = arith.divf %17, %18 : vector<1x256xf32>
    %20 = vector.extract_strided_slice %6 {offsets = [0, 0], sizes = [1, 256], strides = [1, 1]} : vector<2x256xf32> to vector<1x256xf32>
    %cst_10 = arith.constant 9.99999974E-6 : f32
    %21 = vector.broadcast %cst_10 : f32 to vector<1x256xf32>
    %22 = arith.addf %19, %21 : vector<1x256xf32>
    %23 = math.rsqrt %22 : vector<1x256xf32>
    %24 = arith.mulf %20, %23 : vector<1x256xf32>
    %25 = vector.extract_strided_slice %6 {offsets = [1, 0], sizes = [1, 256], strides = [1, 1]} : vector<2x256xf32> to vector<1x256xf32>
    %26 = arith.mulf %10, %24 : vector<1x256xf32>
    %27 = arith.subf %25, %26 : vector<1x256xf32>
    %28 = vector.broadcast %24 : vector<1x256xf32> to vector<8x256xf32>
    %29 = arith.mulf %5, %28 : vector<8x256xf32>
    %30 = vector.broadcast %27 : vector<1x256xf32> to vector<8x256xf32>
    %31 = arith.addf %29, %30 : vector<8x256xf32>
    %cst_11 = arith.constant 0.00999999977 : f32
    %32 = vector.broadcast %cst_11 : f32 to vector<8x256xf32>
    %33 = arith.mulf %32, %31 : vector<8x256xf32>
    %34 = arith.maximumf %31, %33 : vector<8x256xf32>
    %c0_12 = arith.constant 0 : index
    %c0_13 = arith.constant 0 : index
    %35 = vector.load %arg6[%c0_12, %c0_13] : memref<8x256xf32, #tpu.memory_space<vmem>>, vector<8x256xf32>
    %36 = arith.truncf %34 : vector<8x256xf32> to vector<8x256xbf16>
    %c0_14 = arith.constant 0 : index
    %c0_15 = arith.constant 0 : index
    %37 = vector.load %arg4[%c0_14, %c0_15] : memref<256x256xbf16, #tpu.memory_space<vmem>>, vector<256x256xbf16>
    %cst_16 = arith.constant dense<0.000000e+00> : vector<8x256xf32>
    %38 = tpu.matmul %36, %37, %cst_16 {dimension_numbers = #tpu.dot_dimension_numbers<[1], [0], [0], [1], [0, 0, 1, 1], [], []>} : vector<8x256xbf16>, vector<256x256xbf16>, vector<8x256xf32> -> vector<8x256xf32>
    %39 = arith.addf %35, %38 : vector<8x256xf32>
    %c0_17 = arith.constant 0 : index
    %c0_18 = arith.constant 0 : index
    %40 = vector.load %arg6[%c0_17, %c0_18] : memref<8x256xf32, #tpu.memory_space<vmem>>, vector<8x256xf32>
    tpu.vector_store %arg6[%c0_17, %c0_18], %39 {strides = array<i32>} : memref<8x256xf32, #tpu.memory_space<vmem>>, vector<8x256xf32>,
    %c1_i32 = arith.constant 1 : i32
    %41 = arith.cmpi eq, %arg0, %c1_i32 : i32
    %42 = arith.extui %41 : i1 to i32
    %c0_i32_19 = arith.constant 0 : i32
    %43 = arith.cmpi ne, %42, %c0_i32_19 : i32
    scf.if %43 {
      %c0_20 = arith.constant 0 : index
      %c0_21 = arith.constant 0 : index
      %44 = vector.load %arg6[%c0_20, %c0_21] : memref<8x256xf32, #tpu.memory_space<vmem>>, vector<8x256xf32>
      %c0_22 = arith.constant 0 : index
      %c0_23 = arith.constant 0 : index
      %45 = vector.load %arg5[%c0_22, %c0_23] : memref<2x256xf32, #tpu.memory_space<vmem>>, vector<2x256xf32>
      %cst_24 = arith.constant dense<0.000000e+00> : vector<256xf32>
      %46 = vector.multi_reduction <add>, %44, %cst_24 [0] : vector<8x256xf32> to vector<256xf32>
      %47 = vector.shape_cast %46 : vector<256xf32> to vector<1x256xf32>
      %cst_25 = arith.constant 8.000000e+00 : f32
      %48 = vector.broadcast %cst_25 : f32 to vector<1x256xf32>
      %49 = arith.divf %47, %48 : vector<1x256xf32>
      %50 = vector.broadcast %49 : vector<1x256xf32> to vector<8x256xf32>
      %51 = arith.subf %44, %50 : vector<8x256xf32>
      %52 = vector.broadcast %49 : vector<1x256xf32> to vector<8x256xf32>
      %53 = arith.subf %44, %52 : vector<8x256xf32>
      %54 = arith.mulf %51, %53 : vector<8x256xf32>
      %cst_26 = arith.constant dense<0.000000e+00> : vector<256xf32>
      %55 = vector.multi_reduction <add>, %54, %cst_26 [0] : vector<8x256xf32> to vector<256xf32>
      %56 = vector.shape_cast %55 : vector<256xf32> to vector<1x256xf32>
      %cst_27 = arith.constant 8.000000e+00 : f32
      %57 = vector.broadcast %cst_27 : f32 to vector<1x256xf32>
      %58 = arith.divf %56, %57 : vector<1x256xf32>
      %59 = vector.extract_strided_slice %45 {offsets = [0, 0], sizes = [1, 256], strides = [1, 1]} : vector<2x256xf32> to vector<1x256xf32>
      %cst_28 = arith.constant 9.99999974E-6 : f32
      %60 = vector.broadcast %cst_28 : f32 to vector<1x256xf32>
      %61 = arith.addf %58, %60 : vector<1x256xf32>
      %62 = math.rsqrt %61 : vector<1x256xf32>
      %63 = arith.mulf %59, %62 : vector<1x256xf32>
      %64 = vector.extract_strided_slice %45 {offsets = [1, 0], sizes = [1, 256], strides = [1, 1]} : vector<2x256xf32> to vector<1x256xf32>
      %65 = arith.mulf %49, %63 : vector<1x256xf32>
      %66 = arith.subf %64, %65 : vector<1x256xf32>
      %67 = vector.broadcast %63 : vector<1x256xf32> to vector<8x256xf32>
      %68 = arith.mulf %44, %67 : vector<8x256xf32>
      %69 = vector.broadcast %66 : vector<1x256xf32> to vector<8x256xf32>
      %70 = arith.addf %68, %69 : vector<8x256xf32>
      %cst_29 = arith.constant 0.00999999977 : f32
      %71 = vector.broadcast %cst_29 : f32 to vector<8x256xf32>
      %72 = arith.mulf %71, %70 : vector<8x256xf32>
      %73 = arith.maximumf %70, %72 : vector<8x256xf32>
      %cst_30 = arith.constant 0.000000e+00 : f32
      %74 = vector.broadcast %cst_30 : f32 to vector<8x256xf32>
      %75 = arith.maximumf %73, %74 : vector<8x256xf32>
      %c0_31 = arith.constant 0 : index
      %c0_32 = arith.constant 0 : index
      %76 = vector.load %arg6[%c0_31, %c0_32] : memref<8x256xf32, #tpu.memory_space<vmem>>, vector<8x256xf32>
      tpu.vector_store %arg6[%c0_31, %c0_32], %75 {strides = array<i32>} : memref<8x256xf32, #tpu.memory_space<vmem>>, vector<8x256xf32>,
    } else {
    }
    return
  }
  func.func @transform_0(%arg0: i32) -> (i32, i32) {
    %c0_i32 = arith.constant 0 : i32
    %c0_i32_0 = arith.constant 0 : i32
    %c0_i32_1 = arith.constant 0 : i32
    return %c0_i32, %c0_i32_0 : i32, i32
  }
  func.func @transform_1(%arg0: i32) -> (i32, i32) {
    %c0_i32 = arith.constant 0 : i32
    %c0_i32_0 = arith.constant 0 : i32
    return %c0_i32, %arg0 : i32, i32
  }
  func.func @transform_2(%arg0: i32) -> (i32, i32) {
    %c0_i32 = arith.constant 0 : i32
    %c0_i32_0 = arith.constant 0 : i32
    return %c0_i32, %arg0 : i32, i32
  }
  func.func @transform_3(%arg0: i32) -> (i32, i32) {
    %c0_i32 = arith.constant 0 : i32
    %c0_i32_0 = arith.constant 0 : i32
    return %arg0, %c0_i32 : i32, i32
  }
  func.func @transform_4(%arg0: i32) -> (i32, i32) {
    %c0_i32 = arith.constant 0 : i32
    %c0_i32_0 = arith.constant 0 : i32
    %c0_i32_1 = arith.constant 0 : i32
    return %c0_i32, %c0_i32_0 : i32, i32
  }
  func.func @transform_5(%arg0: i32) -> (i32, i32) {
    %c0_i32 = arith.constant 0 : i32
    %c0_i32_0 = arith.constant 0 : i32
    %c0_i32_1 = arith.constant 0 : i32
    return %c0_i32, %c0_i32_0 : i32, i32
  }
}

</mosaic_0001>

<bundles_post_ra>
// kernel: tpu_custom_call.1
= control target key start
LH: loop header
LB: loop body
LE: loop exit
PB: predicated region body
PF: predicated region fallthrough
CT: control target
= control target key end

     0   :  { %10 = vsyncpa [#allocation3], 0  ;;  %s1736_s0 = inlined_call_operand.hbm [shape: bf16[8,48], index: 0, kind: input, shape index: {}]   ;;  %s1737_s1 = inlined_call_operand.hbm [shape: bf16[48,512], index: 1, kind: input, shape index: {}]   ;;  %s1738_s2 = inlined_call_operand.hbm [shape: f32[2,512], index: 2, kind: input, shape index: {}]   ;;  %s1739_s3 = inlined_call_operand.hbm [shape: bf16[512,256], index: 3, kind: input, shape index: {}]   ;;  %s1740_s4 = inlined_call_operand.vmem [shape: f32[2,256], index: 4, kind: input, shape index: {}]   ;;  %s1741_s5 = inlined_call_operand.hbm [shape: f32[8,256], index: 5, kind: output, shape index: {}]  }
   0x1   :  { %11 = vsyncpa [#allocation6], 0 }
   0x2   :  { %13 = vsyncpa [#allocation6 + $0x1], 0 }
   0x3   :  { %14 = vsyncpa [#allocation9], 0 }
   0x4   :  { %16 = vsyncpa [#allocation9 + $0x1], 0 }
   0x5   :  { %17 = vsyncpa [#allocation4], 0  ;;  %s1425_s18 = smov 0   ;;  %s1427_s19 = smov 0  }
   0x6   :  { %s1429_s20 = smov 0   ;;  %s1431_s21 = smov 0  }
   0x7 LB: > { %s1446_s22 = sadd.s32 1, %s1382_s21   ;;  %s51_s23 = sadd.s32 1, %s1378_s20  ;;  %s1382_s21 = sphi %s1431_s21, %s1760_s21   ;;  %s1378_s20 = sphi %s1429_s20, %s1759_s20   ;;  %s1374_s19 = sphi %s1427_s19, %s1758_s19   ;;  %s1370_s18 = sphi %s1425_s18, %s1757_s18  }
   0x8   : > { %s48_s24 = ssub.s32 %s1382_s21, %s1446_s22  ;;  %p58_p0 = scmp.ne.s32.totalorder %s1378_s20, %s1374_s19 }
   0x9   : > { %p49_p1 = scmp.eq.s32.totalorder %s48_s24, 0  ;;  %p59_p2 = scmp.eq.s32.totalorder %s1382_s21, 0 }
   0xa   : > { %p1093_p3 = scmp.lt.s32.totalorder %s1382_s21, 2  ;;  %s196_s26 = sand.u32 1, %s1382_s21  }
   0xb   : > { %s1456_s25 = scalar_select %p49_p1, %s1378_s20, %s51_s23  }
   0xc   : > { %p60_p4 = por %p59_p2, %p58_p0  ;;  %s1460_s27 = sand.u32 1, %s1378_s20  }
   0xd   : > { %s1062_s28 = smul.u32 48, %s1460_s27  ;;  %s1058_s29 = sshll.u32 %s1382_s21, 7 }
   0xe   : > { %s1467_s7 = scalar_lea.hbm %s1737_s1, %s1058_s29  ;;  %p1469_p5 = pnand %p1093_p3, %p60_p4 }
   0xf   : > { %s200_s9 = scalar_lea.vmem [#allocation5], %s1062_s28  ;;  %s1475_s11 = scalar_lea.sflag [#allocation6], %s196_s26 }
  0x10   : > { %s207_s10 = sshll.u32 %s200_s9, 4  ;;  %s1202_s12 = scalar_lea.hbm %s1467_s7, 768  ;;  %s1473_s10 = int_to_ptr.vmem [resolvable:$true] %s207_s10 }
  0x11   : > { %p1203_p6 = scmp.ne.s32.totalorder %s1467_s7, %s1202_s12  ;;  %p1481_p7 = pneg %p1469_p5 }
  0x12   : > { %s1207_s16 = scalar_lea.hbm %s1737_s1, 1536  ;;  %p1208_p10 = scmp.lt.s32.totalorder %s1467_s7, %s1737_s1 }
  0x13   : > { %p1205_p8 = pnand %p1481_p7, %p1203_p6  ;;  %p1209_p11 = scmp.lt.s32.totalorder %s1207_s16, %s1202_s12 }
  0x15   : > { %p1206_p9 = pneg %p1205_p8  ;;  %p1210_p12 = por %p1209_p11, %p1208_p10 }
  0x17   : > { %p1211_p13 = pnand %p1210_p12, %p1206_p9 }
  0x19   : > { %1214 = shalt.err (!%p1211_p13)
}
  0x1a   : > { %s1215_s24 = scalar_lea.vmem %s1473_s10, 768  ;;  %s1384_s26 = smov [#allocation5]  }
  0x1b   : > { %p1216_p0 = scmp.ne.s32.totalorder %s1473_s10, %s1215_s24  ;;  %s1220_s28 = sshll.u32 %s1384_s26, 4  ;;  %s1221_s28 = int_to_ptr.vmem [resolvable:$false] %s1220_s28 }
  0x1c   : > { %s1222_s29 = scalar_lea.vmem %s1221_s28, 1536  ;;  %p1223_p3 = scmp.lt.s32.totalorder %s1473_s10, %s1221_s28 }
  0x1d   : > { %p1218_p1 = pnand %p1216_p0, %p1481_p7  ;;  %p1224_p4 = scmp.lt.s32.totalorder %s1222_s29, %s1215_s24 }
  0x1f   : > { %p1219_p2 = pneg %p1218_p1  ;;  %p1225_p6 = por %p1224_p4, %p1223_p3 }
  0x21   : > { %p1226_p8 = pnand %p1225_p6, %p1219_p2 }
  0x23   : > { %1229 = shalt.err (!%p1226_p8)
}
  0x24   : > { %s1385_s30 = smov 256   ;;  %s1743_s6 = smov 128  }
  0x25   : > { %s1387_s9 = smov 8   ;;  %s1507_s12 = sadd.s32 4294967295, %s1382_s21  }
  0x26   : > { %1085 = dma.hbm_to_vmem [thread:$0]  (!%p1469_p5), %s1467_s7, 768, %s1473_s10, %s1475_s11, %s1385_s30, %s1743_s6, %s1387_s9  }
  0x27   : > { %p64_p9 = scmp.ne.s32.totalorder %s1374_s19, %s1370_s18  ;;  %p1742_p10 = scmp.eq.s32.totalorder %s1507_s12, 0 }
  0x28   : > { %p997_p11 = scmp.ge.s32.totalorder %s1382_s21, 1  ;;  %p169_p12 = scmp.lt.s32.totalorder %s1382_s21, 3 }
  0x29   : > { %p1516_p13 = por %p1742_p10, %p64_p9  ;;  %s1388_s7 = smov [#allocation2]  }
  0x2a   : > { %p1521_p1 = pnand %p997_p11, %p169_p12  ;;  %s182_s10 = sshll.u32 %s1388_s7, 4  ;;  %s183_s10 = int_to_ptr.vmem [resolvable:$true] %s182_s10 }
  0x2b   : > { %s1748_s14 = scalar_select %p1516_p13, 1, 0 }
  0x2c   : > { %s1749_s15 = scalar_select %p1521_p1, 1, 0 }
  0x2d   : > { %s1002_s16 = sshll.u32 %s1460_s27, 2  ;;  %p1078_p2 = pneg %p1521_p1 }
  0x2e   : > { %s1059_s18 = sshll.u32 %s1382_s21, 6  ;;  %s221_s28 = scalar_lea.vmem [#allocation7], %s1002_s16 }
  0x2f   : > { %p1531_p3 = pnand %p1078_p2, %p1742_p10  ;;  %s1538_s26 = scalar_lea.hbm %s1738_s2, %s1059_s18 }
  0x30   : > { %s229_s29 = sshll.u32 %s221_s28, 4  ;;  %s1241_s30 = scalar_lea.vmem %s183_s10, 64  ;;  %s1540_s29 = int_to_ptr.vmem [resolvable:$true] %s229_s29 }
  0x31   : > { %p1232_p4 = pneg %p1531_p3  ;;  %p1242_p6 = scmp.ne.s32.totalorder %s183_s10, %s1241_s30 }
  0x32   : > { %p1249_p11 = scmp.lt.s32.totalorder %s183_s10, %s183_s10  ;;  %p1250_p12 = scmp.lt.s32.totalorder %s1241_s30, %s1241_s30 }
  0x33   : > { %p1244_p8 = pnand %p1242_p6, %p1232_p4 }
  0x34   : > { %p1251_p2 = por %p1250_p12, %p1249_p11 }
  0x35   : > { %p1245_p9 = pneg %p1244_p8 }
  0x37   : > { %p1252_p0 = pnand %p1251_p2, %p1245_p9 }
  0x39   : > { %1255 = shalt.err (!%p1252_p0)
}
  0x3a   : > { %1081 = dma.hbm_to_vmem [thread:$0]  (!%p1531_p3), %s1736_s0, 64, %s183_s10, [#allocation3]  }
  0x3b   : > { %s1256_s16 = scalar_lea.hbm %s1538_s26, 64  ;;  %s1261_s28 = scalar_lea.hbm %s1738_s2, 128 }
  0x3c   : > { %p1257_p10 = scmp.ne.s32.totalorder %s1538_s26, %s1256_s16  ;;  %p1262_p0 = scmp.lt.s32.totalorder %s1538_s26, %s1738_s2 }
  0x3d   : > { %p1263_p8 = scmp.lt.s32.totalorder %s1261_s28, %s1256_s16 }
  0x3e   : > { %p1259_p4 = pnand %p1257_p10, %p1481_p7 }
  0x3f   : > { %p1264_p9 = por %p1263_p8, %p1262_p0 }
  0x40   : > { %p1260_p6 = pneg %p1259_p4 }
  0x42   : > { %p1265_p11 = pnand %p1264_p9, %p1260_p6 }
  0x44   : > { %1268 = shalt.err (!%p1265_p11)
}
  0x45   : > { %s1269_s10 = scalar_lea.vmem %s1540_s29, 64  ;;  %s1389_s17 = smov [#allocation7]  }
  0x46   : > { %p1270_p3 = scmp.ne.s32.totalorder %s1540_s29, %s1269_s10  ;;  %s1274_s7 = sshll.u32 %s1389_s17, 4  ;;  %s1275_s7 = int_to_ptr.vmem [resolvable:$false] %s1274_s7 }
  0x47   : > { %s1276_s18 = scalar_lea.vmem %s1275_s7, 128  ;;  %p1277_p2 = scmp.lt.s32.totalorder %s1540_s29, %s1275_s7 }
  0x48   : > { %p1272_p10 = pnand %p1270_p3, %p1481_p7  ;;  %p1278_p4 = scmp.lt.s32.totalorder %s1276_s18, %s1269_s10 }
  0x4a   : > { %p1273_p12 = pneg %p1272_p10  ;;  %p1279_p13 = por %p1278_p4, %p1277_p2 }
  0x4c   : > { %p1280_p1 = pnand %p1279_p13, %p1273_p12 }
  0x4e   : > { %1283 = shalt.err (!%p1280_p1)
}
  0x4f   : > { %1088 = dma.hbm_to_vmem [thread:$0]  (!%p1469_p5), %s1538_s26, 64, %s1540_s29, %s1475_s11  }
  0x50   : > { %s1005_s6 = sshll.u32 %s1460_s27, 8  ;;  %s1061_s16 = sshll.u32 %s1382_s21, 12 }
  0x51   : > { %s1575_s28 = scalar_lea.hbm %s1739_s3, %s1061_s16  ;;  %s240_s30 = scalar_lea.vmem [#allocation8], %s1005_s6 }
  0x52   : > { %s248_s10 = sshll.u32 %s240_s30, 4  ;;  %s237_s17 = scalar_lea.sflag [#allocation9], %s1460_s27  ;;  %s1577_s10 = int_to_ptr.vmem [resolvable:$true] %s248_s10 }
  0x53   : > { %s1284_s7 = scalar_lea.hbm %s1575_s28, 4096  ;;  %s1289_s26 = scalar_lea.hbm %s1739_s3, 8192 }
  0x54   : > { %p1285_p13 = scmp.ne.s32.totalorder %s1575_s28, %s1284_s7  ;;  %p1290_p0 = scmp.lt.s32.totalorder %s1575_s28, %s1739_s3 }
  0x55   : > { %p1291_p8 = scmp.lt.s32.totalorder %s1289_s26, %s1284_s7 }
  0x56   : > { %p1287_p1 = pnand %p1285_p13, %p1481_p7 }
  0x57   : > { %p1292_p9 = por %p1291_p8, %p1290_p0 }
  0x58   : > { %p1288_p6 = pneg %p1287_p1 }
  0x5a   : > { %p1293_p11 = pnand %p1292_p9, %p1288_p6 }
  0x5c   : > { %1296 = shalt.err (!%p1293_p11)
}
  0x5d   : > { %s1297_s27 = scalar_lea.vmem %s1577_s10, 4096  ;;  %s1390_s6 = smov [#allocation8]  }
  0x5e   : > { %p1298_p3 = scmp.ne.s32.totalorder %s1577_s10, %s1297_s27  ;;  %s1302_s16 = sshll.u32 %s1390_s6, 4  ;;  %s1303_s16 = int_to_ptr.vmem [resolvable:$false] %s1302_s16 }
  0x5f   : > { %s1304_s23 = scalar_lea.vmem %s1303_s16, 8192  ;;  %p1305_p2 = scmp.lt.s32.totalorder %s1577_s10, %s1303_s16 }
  0x60   : > { %p1300_p10 = pnand %p1298_p3, %p1481_p7  ;;  %p1306_p4 = scmp.lt.s32.totalorder %s1304_s23, %s1297_s27 }
  0x62   : > { %p1301_p12 = pneg %p1300_p10  ;;  %p1307_p13 = por %p1306_p4, %p1305_p2 }
  0x64   : > { %p1308_p1 = pnand %p1307_p13, %p1301_p12 }
  0x66   : > { %1311 = shalt.err (!%p1308_p1)
}
  0x67   : > { %s1751_s24 = smov 128   ;;  %p1752_p7 = scmp.ne.s32.totalorder %s1749_s15, 0 }
  0x68   : > { %1091 = dma.hbm_to_vmem [thread:$0]  (!%p1469_p5), %s1575_s28, 4096, %s1577_s10, %s237_s17, %s1751_s24, %s1751_s24, %s1387_s9  }
  0x69   : > { %260 = sbr.rel (%p1752_p7) target bundleno = 715 (0x2cb), region = 40  ;;  %p1753_p6 = scmp.eq.s32.totalorder (!%p1752_p7), %s1507_s12, 0 }
  0x6e   : > { %1353 = dma.done.wait (%p1753_p6), [#allocation3], 64   ;;  %p1754_p0 = pmov %p1753_p6 }
  0x6f   : > { %s266_s13 = sand.u32 1, %s1507_s12   ;;  %s268_s8 = sand.u32 1, %s1374_s19  }
  0x70   : > { %1355 = vsyncadd (%p1754_p0), [#allocation3], 4294967232  ;;  %s1063_s30 = smul.u32 48, %s268_s8  ;;  %s267_s7 = scalar_lea.sflag [#allocation6], %s266_s13 }
  0x71   : > { %p1755_p8 = scmp.ne.s32.totalorder %s1748_s14, 0 }
  0x72   : > { %s270_s11 = scalar_lea.vmem [#allocation5], %s1063_s30 }
  0x73   : > { %1357 = dma.done.wait (%p1755_p8), %s267_s7, 832  }
  0x74   : > { %1359 = vsyncadd (%p1755_p8), %s267_s7, 4294966464  ;;  %s1011_s9 = sshll.u32 %s268_s8, 2  ;;  %s1012_s15 = sshll.u32 %s268_s8, 8 }
  0x75   : > { %s1615_s28 = scalar_lea.vmem [#allocation7], %s1011_s9  ;;  %s285_s10 = scalar_lea.sflag [#allocation9], %s268_s8 }
  0x76   : > { %s1617_s17 = scalar_lea.vmem [#allocation8], %s1012_s15 }
  0x77   : > { %1361 = dma.done.wait (%p1755_p8), %s285_s10, 4096  }
  0x78   : > { %1363 = vsyncadd (%p1755_p8), %s285_s10, 4294963200  ;;  %p1756_p5 = scmp.ne.s32.totalorder %s1507_s12, 0 }
  0x7a   : > { %327 = sbr.rel (%p1756_p5) target bundleno = 129 (0x81), region = 60 }
  0x7f   : > { %v1391_v0 = vmov 0.0  }
  0x80   : > { %328 = vst [vmem:[#allocation10] sm:$0xff] %v1391_v0  ;;  %329 = vst [vmem:[#allocation10 + $0x8] sm:$0xff] %v1391_v0 }
  0x81 PF: > { %v1137_v1 = vld [vmem:[%s270_s11 + $0x24] ss:$8 sps:$4 sm:$0xff]   ;;  %v1139_v2 = vld [vmem:[%s270_s11 + $0x20] ss:$8 sps:$4 sm:$0xff]   ;;  %v1392_v3 = vmov 0   ;;  %vm367_vm0 = vcmask 392192  }
  0x82   : > { %403 = vmatprep.mubr.bf16.mxu0 %v1392_v3  ;;  %381 = vmatprep.subr.bf16.mxu0 %v1137_v1  ;;  %v1140_v4 = vld [vmem:[%s270_s11 + $0x14] ss:$8 sps:$4 sm:$0xff]   ;;  %v1142_v5 = vld [vmem:[%s270_s11 + $0x10] ss:$8 sps:$4 sm:$0xff]   ;;  %v1143_v6 = vld [vmem:[%s270_s11 + $0x4] ss:$8 sps:$4 sm:$0xff]  }
  0x83   : > { %382 = vmatpush1.bf16.msra.mxu0 %v1139_v2  ;;  %v1145_v7 = vld [vmem:[%s270_s11] ss:$8 sps:$4 sm:$0xff]   ;;  %v330_v8 = vld [vmem:[#allocation2] sm:$0xf]  ;;  %v1149_v11 = vld [vmem:[%s1617_s17 + $0x64] ss:$8 sps:$4 sm:$0xff]  }
  0x84   : > { %383 = vmatprep.subr.bf16.mxu0 %v1140_v4  ;;  %v1146_v9 = vld [vmem:[%s1617_s17 + $0x74] ss:$8 sps:$4 sm:$0xff]   ;;  %v1148_v10 = vld [vmem:[%s1617_s17 + $0x70] ss:$8 sps:$4 sm:$0xff]   ;;  %v1151_v12 = vld [vmem:[%s1617_s17 + $0x60] ss:$8 sps:$4 sm:$0xff]  }
  0x85   : > { %719 = vmatprep.subr.bf16.mxu1 %v1146_v9  ;;  %v1152_v13 = vld [vmem:[%s1617_s17 + $0x54] ss:$8 sps:$4 sm:$0xff]   ;;  %v1154_v14 = vld [vmem:[%s1617_s17 + $0x50] ss:$8 sps:$4 sm:$0xff]   ;;  %v1155_v15 = vld [vmem:[%s1617_s17 + $0x44] ss:$8 sps:$4 sm:$0xff]  }
  0x86   : > { %720 = vmatpush1.bf16.msra.mxu1 %v1148_v10  ;;  %v1157_v16 = vld [vmem:[%s1617_s17 + $0x40] ss:$8 sps:$4 sm:$0xff]   ;;  %v1158_v17 = vld [vmem:[%s1617_s17 + $0x34] ss:$8 sps:$4 sm:$0xff]   ;;  %v1160_v18 = vld [vmem:[%s1617_s17 + $0x30] ss:$8 sps:$4 sm:$0xff]  }
  0x87   : > { %384 = vmatpush1.bf16.msra.mxu0 %v1142_v5  ;;  %721 = vmatprep.subr.bf16.mxu1 %v1149_v11  ;;  %v1161_v19 = vld [vmem:[%s1617_s17 + $0x24] ss:$8 sps:$4 sm:$0xff]   ;;  %v1163_v20 = vld [vmem:[%s1617_s17 + $0x20] ss:$8 sps:$4 sm:$0xff]   ;;  %v1164_v21 = vld [vmem:[%s1617_s17 + $0x14] ss:$8 sps:$4 sm:$0xff]  }
  0x88   : > { %385 = vmatprep.subr.bf16.mxu0 %v1143_v6  ;;  %v1166_v22 = vld [vmem:[%s1617_s17 + $0x10] ss:$8 sps:$4 sm:$0xff]   ;;  %v1167_v23 = vld [vmem:[%s1617_s17 + $0x4] ss:$8 sps:$4 sm:$0xff]   ;;  %v1169_v24 = vld [vmem:[%s1617_s17] ss:$8 sps:$4 sm:$0xff]  }
  0x89   : > { %v1170_v25 = vld [vmem:[%s1617_s17 + $0xf4] ss:$8 sps:$4 sm:$0xff]   ;;  %v1172_v26 = vld [vmem:[%s1617_s17 + $0xf0] ss:$8 sps:$4 sm:$0xff]   ;;  %v1173_v27 = vld [vmem:[%s1617_s17 + $0xe4] ss:$8 sps:$4 sm:$0xff]  }
  0x8a   : > { %722 = vmatpush1.bf16.msra.mxu1 %v1151_v12  ;;  %v1175_v28 = vld [vmem:[%s1617_s17 + $0xe0] ss:$8 sps:$4 sm:$0xff]   ;;  %v1176_v29 = vld [vmem:[%s1617_s17 + $0xd4] ss:$8 sps:$4 sm:$0xff]   ;;  %v1178_v30 = vld [vmem:[%s1617_s17 + $0xd0] ss:$8 sps:$4 sm:$0xff]  }
  0x8b   : > { %386 = vmatpush1.bf16.msra.mxu0 %v1145_v7  ;;  %723 = vmatprep.subr.bf16.mxu1 %v1152_v13  ;;  %v1179_v31 = vld [vmem:[%s1617_s17 + $0xc4] ss:$8 sps:$4 sm:$0xff]   ;;  %v1181_v32 = vld [vmem:[%s1617_s17 + $0xc0] ss:$8 sps:$4 sm:$0xff]   ;;  %v1182_v33 = vld [vmem:[%s1617_s17 + $0xb4] ss:$8 sps:$4 sm:$0xff]  }
  0x8c   : > { %v1184_v34 = vld [vmem:[%s1617_s17 + $0xb0] ss:$8 sps:$4 sm:$0xff]   ;;  %v1185_v35 = vld [vmem:[%s1617_s17 + $0xa4] ss:$8 sps:$4 sm:$0xff]   ;;  %v1187_v36 = vld [vmem:[%s1617_s17 + $0xa0] ss:$8 sps:$4 sm:$0xff]  }
  0x8d   : > { %v1188_v37 = vld [vmem:[%s1617_s17 + $0x94] ss:$8 sps:$4 sm:$0xff]   ;;  %v1190_v38 = vld [vmem:[%s1617_s17 + $0x90] ss:$8 sps:$4 sm:$0xff]   ;;  %v1191_v39 = vld [vmem:[%s1617_s17 + $0x84] ss:$8 sps:$4 sm:$0xff]  }
  0x8e   : > { %1020 = vmatmul.mubr.msk.bf16.vlgmr.msra.gmra.mxu0 %vm367_vm0, %v330_v8  ;;  %724 = vmatpush1.bf16.msra.mxu1 %v1154_v14  ;;  %v1193_v40 = vld [vmem:[%s1617_s17 + $0x80] ss:$8 sps:$4 sm:$0xff]   ;;  %p1053_p9 = scmp.ne.s32.totalorder %s1507_s12, 1 }
  0x8f   : > { %725 = vmatprep.subr.bf16.mxu1 %v1155_v15  ;;  %v1393_v15 = vmov 1983009808  }
  0x92   : > { %726 = vmatpush1.bf16.msra.mxu1 %v1157_v16  ;;  %v454_v16 = vunpack.c.l.s4 %v1393_v15 }
  0x93   : > { %727 = vmatprep.subr.bf16.mxu1 %v1158_v17  ;;  %v456_v17 = vlaneseq }
  0x96   : > { %728 = vmatpush1.bf16.msra.mxu1 %v1160_v18  ;;  %v455_v18 = vunpack.c.0.s8 %v454_v16 }
  0x97   : > { %729 = vmatprep.subr.bf16.mxu1 %v1161_v19  ;;  %v1667_v19 = vshrl.u32 %v456_v17, 7 }
  0x9a   : > { %730 = vmatpush1.bf16.msra.mxu1 %v1163_v20 }
  0x9b   : > { %731 = vmatprep.subr.bf16.mxu1 %v1164_v21  ;;  %v1670_v21 = vsub.s32 %v455_v18, %v1667_v19 }
  0x9e   : > { %732 = vmatpush1.bf16.msra.mxu1 %v1166_v22 }
  0x9f   : > { %733 = vmatprep.subr.bf16.mxu1 %v1167_v23 }
  0xa2   : > { %734 = vmatpush1.bf16.msra.mxu1 %v1169_v24  ;;  %v412_v24 = vld [vmem:[%s1615_s28] sm:$0xf] }
  0xa3   : > { %735 = vmatprep.subr.bf16.mxu1 %v1170_v25 }
  0xa6   : > { %736 = vmatpush2.bf16.msra.mxu1 %v1172_v26  ;;  %v1675_v26 = vsub.s32 0, %v1667_v19 }
  0xa7   : > { %737 = vmatprep.subr.bf16.mxu1 %v1173_v27  ;;  %v469_v27 = vsub.s32 2, %v1667_v19 }
  0xaa   : > { %738 = vmatpush2.bf16.msra.mxu1 %v1175_v28 }
  0xab   : > { %739 = vmatprep.subr.bf16.mxu1 %v1176_v29 }
  0xae   : > { %740 = vmatpush2.bf16.msra.mxu1 %v1178_v30 }
  0xaf   : > { %741 = vmatprep.subr.bf16.mxu1 %v1179_v31 }
  0xb2   : > { %742 = vmatpush2.bf16.msra.mxu1 %v1181_v32 }
  0xb3   : > { %743 = vmatprep.subr.bf16.mxu1 %v1182_v33 }
  0xb6   : > { %744 = vmatpush2.bf16.msra.mxu1 %v1184_v34 }
  0xb7   : > { %745 = vmatprep.subr.bf16.mxu1 %v1185_v35 }
  0xba   : > { %746 = vmatpush2.bf16.msra.mxu1 %v1187_v36  ;;  %v1683_v36 = vsub.s32 1, %v1667_v19 }
  0xbb   : > { %747 = vmatprep.subr.bf16.mxu1 %v1188_v37  ;;  %v505_v37 = vsub.s32 3, %v1667_v19 }
  0xbe   : > { %748 = vmatpush2.bf16.msra.mxu1 %v1190_v38 }
  0xbf   : > { %749 = vmatprep.subr.bf16.mxu1 %v1191_v39 }
  0xc2   : > { %750 = vmatpush2.bf16.msra.mxu1 %v1193_v40 }
 0x14e   : > { %v1657_v41 = vpop.f32.mrf.mxu0 }
 0x14f   : > { %v413_v42 = vrot.slane %v1657_v41, 4 }
 0x150   : > { %v1660_v43 = vpop.f32.mrf.mxu0 }
 0x151   : > { %v414_v44 = vadd.f32 %v413_v42, %v1657_v41  ;;  %v419_v45 = vrot.slane %v1660_v43, 4 }
 0x152   : > { %v409_v46 = vpop.f32.mrf.mxu0 }
 0x153   : > { %v415_v47 = vrot.slane %v414_v44, 2  ;;  %v420_v48 = vadd.f32 %v419_v45, %v1660_v43 }
 0x154   : > { %v410_v49 = vpop.f32.mrf.mxu0 }
 0x155   : > { %v416_v50 = vadd.f32 %v415_v47, %v414_v44  ;;  %v421_v51 = vrot.slane %v420_v48, 2 }
 0x157   : > { %v417_v52 = vrot.slane %v416_v50, 1  ;;  %v422_v53 = vadd.f32 %v421_v51, %v420_v48 }
 0x159   : > { %v418_v54 = vadd.f32 %v417_v52, %v416_v50  ;;  %v423_v55 = vrot.slane %v422_v53, 1 }
 0x15b   : > { %v426_v56 = vmul.f32 0.125, %v418_v54  ;;  %v424_v57 = vadd.f32 %v423_v55, %v422_v53 }
 0x15d   : > { %v428_v58 = vsub.f32 %v1657_v41, %v426_v56  ;;  %v427_v59 = vmul.f32 0.125, %v424_v57  ;;  %v523_v57 = vld [vmem:[#allocation10] sm:$0xff] }
 0x15f   : > { %v430_v60 = vmul.f32 %v428_v58, %v428_v58  ;;  %v429_v61 = vsub.f32 %v1660_v43, %v427_v59 }
 0x161   : > { %v432_v62 = vrot.slane %v430_v60, 4  ;;  %v431_v63 = vmul.f32 %v429_v61, %v429_v61 }
 0x163   : > { %v433_v0 = vadd.f32 %v432_v62, %v430_v60  ;;  %v438_v1 = vrot.slane %v431_v63, 4 }
 0x165   : > { %v434_v2 = vrot.slane %v433_v0, 2  ;;  %v439_v3 = vadd.f32 %v438_v1, %v431_v63 }
 0x167   : > { %v435_v4 = vadd.f32 %v434_v2, %v433_v0  ;;  %v440_v5 = vrot.slane %v439_v3, 2 }
 0x169   : > { %v436_v6 = vrot.slane %v435_v4, 1  ;;  %v441_v7 = vadd.f32 %v440_v5, %v439_v3 }
 0x16b   : > { %v437_v8 = vadd.f32 %v436_v6, %v435_v4  ;;  %v442_v9 = vrot.slane %v441_v7, 1 }
 0x16d   : > { %v444_v10 = vmul.f32 0.125, %v437_v8  ;;  %v443_v11 = vadd.f32 %v442_v9, %v441_v7 }
 0x16f   : > { %v446_v12 = vadd.f32 1e-05, %v444_v10  ;;  %v445_v13 = vmul.f32 0.125, %v443_v11 }
 0x171   : > { %v447_v14 = vadd.f32 1e-05, %v445_v13  ;;  %1194 = vrsqrt.f32 %v446_v12 }
 0x173   : > { %1196 = vrsqrt.f32 %v447_v14 }
 0x17e   : > { %v1195_v20 = vpop.eup %1194 }
 0x180   : > { %v1197_v22 = vpop.eup %1196 }
 0x181   : > { %v452_v23 = vcombine.low %v1195_v20, %v1197_v22 }
 0x183   : > { %v459_v25 = vrot.slane %v452_v23, %v1670_v21 }
 0x185   : > { %v461_v28 = vmul.f32 %v459_v25, %v412_v24 }
 0x187   : > { %v466_v29 = vrot.slane %v461_v28, %v1675_v26  ;;  %v470_v30 = vrot.slane %v461_v28, %v469_v27 }
 0x189   : > { %v473_v31 = vmul.f32 %v466_v29, %v426_v56  ;;  %v474_v32 = vmul.f32 %v470_v30, %v427_v59  ;;  %v495_v39 = vrot.slane %v470_v30, %v1675_v26  ;;  %v491_v40 = vrot.slane %v466_v29, %v1675_v26  ;;  %v524_v59 = vld [vmem:[#allocation10 + $0x8] sm:$0xff] }
 0x18b   : > { %v477_v33 = vcombine.low %v473_v31, %v474_v32  ;;  %v497_v45 = vmul.f32 %v495_v39, %v1660_v43  ;;  %v496_v47 = vmul.f32 %v491_v40, %v1657_v41 }
 0x18d   : > { %v484_v34 = vrot.slane %v477_v33, %v1670_v21 }
 0x18f   : > { %v485_v35 = vrot.slane %v484_v34, 7 }
 0x191   : > { %v487_v38 = vsub.f32 %v412_v24, %v485_v35 }
 0x193   : > { %v506_v42 = vrot.slane %v487_v38, %v505_v37  ;;  %v502_v44 = vrot.slane %v487_v38, %v1683_v36 }
 0x195   : > { %v516_v46 = vrot.slane %v506_v42, %v1683_v36  ;;  %v512_v48 = vrot.slane %v502_v44, %v1683_v36 }
 0x197   : > { %v518_v49 = vadd.f32 %v516_v46, %v497_v45  ;;  %v517_v50 = vadd.f32 %v512_v48, %v496_v47 }
 0x199   : > { %v520_v51 = vmul.f32 0.01, %v518_v49  ;;  %v519_v52 = vmul.f32 0.01, %v517_v50 }
 0x19b   : > { %v522_v53 = vmax.f32 %v518_v49, %v520_v51  ;;  %v521_v54 = vmax.f32 %v517_v50, %v519_v52 }
 0x19d   : > { %v526_v55 = vpack.c.bf16 %v522_v53, %v522_v53  ;;  %v525_v56 = vpack.c.bf16 %v521_v54, %v521_v54 }
 0x19f   : > { %751 = vmatprep.mubr.bf16.mxu1 %v526_v55 }
 0x1a0   : > { %752 = vmatmul.mubr.bf16.vlgmr.msra.gmra.mxu1 %v525_v56 }
 0x260   : > { %v753_v58 = vpop.f32.mrf.mxu1 }
 0x261   : > { %v760_v43 = vadd.f32 %v753_v58, %v523_v57 }
 0x262   : > { %v755_v60 = vpop.f32.mrf.mxu1  ;;  %767 = sbr.rel (%p1053_p9) target bundleno = 700 (0x2bc), region = 64 }
 0x263   : > { %762 = vst [vmem:[#allocation10] sm:$0xff] %v760_v43  ;;  %v761_v61 = vadd.f32 %v755_v60, %v524_v59 }
 0x264   : > { %v757_v41 = vpop.f32.mrf.mxu1 }
 0x265   : > { %763 = vst [vmem:[#allocation10 + $0x8] sm:$0xff] %v761_v61 }
 0x266   : > { %v758_v62 = vpop.f32.mrf.mxu1 }
 0x267   : > { %v770_v46 = vld [vmem:[%s1740_s4] sm:$0xf] }
 0x26a   : > { %v768_v63 = vld [vmem:[#allocation10] sm:$0xff] }
 0x26b   : > { %v771_v1 = vrot.slane %v768_v63, 4 }
 0x26c   : > { %v769_v0 = vld [vmem:[#allocation10 + $0x8] sm:$0xff] }
 0x26d   : > { %v777_v2 = vrot.slane %v769_v0, 4  ;;  %v772_v3 = vadd.f32 %v771_v1, %v768_v63 }
 0x26f   : > { %v778_v4 = vadd.f32 %v777_v2, %v769_v0  ;;  %v773_v5 = vrot.slane %v772_v3, 2 }
 0x271   : > { %v779_v6 = vrot.slane %v778_v4, 2  ;;  %v774_v7 = vadd.f32 %v773_v5, %v772_v3 }
 0x273   : > { %v780_v8 = vadd.f32 %v779_v6, %v778_v4  ;;  %v775_v9 = vrot.slane %v774_v7, 1 }
 0x275   : > { %v781_v10 = vrot.slane %v780_v8, 1  ;;  %v776_v11 = vadd.f32 %v775_v9, %v774_v7 }
 0x277   : > { %v782_v12 = vadd.f32 %v781_v10, %v780_v8  ;;  %v783_v13 = vmul.f32 0.125, %v776_v11 }
 0x279   : > { %v784_v14 = vmul.f32 0.125, %v782_v12  ;;  %v785_v15 = vsub.f32 %v768_v63, %v783_v13 }
 0x27b   : > { %v786_v16 = vsub.f32 %v769_v0, %v784_v14  ;;  %v787_v17 = vmul.f32 %v785_v15, %v785_v15 }
 0x27d   : > { %v788_v18 = vmul.f32 %v786_v16, %v786_v16  ;;  %v789_v20 = vrot.slane %v787_v17, 4 }
 0x27f   : > { %v795_v22 = vrot.slane %v788_v18, 4  ;;  %v790_v23 = vadd.f32 %v789_v20, %v787_v17 }
 0x281   : > { %v796_v24 = vadd.f32 %v795_v22, %v788_v18  ;;  %v791_v25 = vrot.slane %v790_v23, 2 }
 0x283   : > { %v797_v28 = vrot.slane %v796_v24, 2  ;;  %v792_v29 = vadd.f32 %v791_v25, %v790_v23 }
 0x285   : > { %v798_v30 = vadd.f32 %v797_v28, %v796_v24  ;;  %v793_v31 = vrot.slane %v792_v29, 1 }
 0x287   : > { %v799_v32 = vrot.slane %v798_v30, 1  ;;  %v794_v33 = vadd.f32 %v793_v31, %v792_v29 }
 0x289   : > { %v800_v34 = vadd.f32 %v799_v32, %v798_v30  ;;  %v801_v35 = vmul.f32 0.125, %v794_v33 }
 0x28b   : > { %v802_v38 = vmul.f32 0.125, %v800_v34  ;;  %v803_v39 = vadd.f32 1e-05, %v801_v35 }
 0x28d   : > { %v804_v40 = vadd.f32 1e-05, %v802_v38  ;;  %1198 = vrsqrt.f32 %v803_v39 }
 0x28f   : > { %1200 = vrsqrt.f32 %v804_v40 }
 0x29a   : > { %v1199_v42 = vpop.eup %1198 }
 0x29c   : > { %v1201_v44 = vpop.eup %1200 }
 0x29d   : > { %v809_v45 = vcombine.low %v1199_v42, %v1201_v44 }
 0x29f   : > { %v816_v47 = vrot.slane %v809_v45, %v1670_v21 }
 0x2a1   : > { %v818_v48 = vmul.f32 %v816_v47, %v770_v46 }
 0x2a3   : > { %v823_v49 = vrot.slane %v818_v48, %v1675_v26  ;;  %v827_v50 = vrot.slane %v818_v48, %v469_v27 }
 0x2a5   : > { %v830_v51 = vmul.f32 %v823_v49, %v783_v13  ;;  %v831_v52 = vmul.f32 %v827_v50, %v784_v14  ;;  %v848_v56 = vrot.slane %v823_v49, %v1675_v26  ;;  %v852_v57 = vrot.slane %v827_v50, %v1675_v26 }
 0x2a7   : > { %v834_v53 = vcombine.low %v830_v51, %v831_v52  ;;  %v853_v59 = vmul.f32 %v848_v56, %v768_v63  ;;  %v854_v60 = vmul.f32 %v852_v57, %v769_v0 }
 0x2a9   : > { %v841_v54 = vrot.slane %v834_v53, %v1670_v21 }
 0x2ab   : > { %v842_v55 = vrot.slane %v841_v54, 7 }
 0x2ad   : > { %v844_v58 = vsub.f32 %v770_v46, %v842_v55 }
 0x2af   : > { %v859_v43 = vrot.slane %v844_v58, %v1683_v36  ;;  %v863_v61 = vrot.slane %v844_v58, %v505_v37 }
 0x2b1   : > { %v869_v27 = vrot.slane %v859_v43, %v1683_v36  ;;  %v873_v41 = vrot.slane %v863_v61, %v1683_v36 }
 0x2b3   : > { %v874_v62 = vadd.f32 %v869_v27, %v853_v59  ;;  %v875_v1 = vadd.f32 %v873_v41, %v854_v60 }
 0x2b5   : > { %v876_v21 = vmul.f32 0.01, %v874_v62  ;;  %v877_v2 = vmul.f32 0.01, %v875_v1 }
 0x2b7   : > { %v878_v3 = vmax.f32 %v874_v62, %v876_v21  ;;  %v879_v4 = vmax.f32 %v875_v1, %v877_v2 }
 0x2b9   : > { %v880_v5 = vmax.f32 %v878_v3, 0.0  ;;  %v881_v26 = vmax.f32 %v879_v4, 0.0 }
 0x2bb   : > { %882 = vst [vmem:[#allocation10] sm:$0xff] %v880_v5  ;;  %883 = vst [vmem:[#allocation10 + $0x8] sm:$0xff] %v881_v26 }
 0x2bc PF: > { %p1095_p11 = scmp.eq.s32.totalorder %s1507_s12, 1  ;;  %s1394_s26 = smov [#allocation10]  }
 0x2bd   : > { %s891_s29 = sshll.u32 %s1394_s26, 4  ;;  %s892_s29 = int_to_ptr.vmem [resolvable:$true] %s891_s29 }
 0x2be   : > { %s1312_s18 = scalar_lea.vmem %s892_s29, 256  ;;  %p1319_p2 = scmp.lt.s32.totalorder %s892_s29, %s892_s29 }
 0x2bf   : > { %p1313_p3 = scmp.ne.s32.totalorder %s892_s29, %s1312_s18  ;;  %p1320_p4 = scmp.lt.s32.totalorder %s1312_s18, %s1312_s18 }
 0x2c1   : > { %p1314_p10 = pnand %p1313_p3, %p1095_p11  ;;  %p1321_p13 = por %p1320_p4, %p1319_p2 }
 0x2c3   : > { %p1315_p12 = pneg %p1314_p10 }
 0x2c5   : > { %p1322_p1 = pnand %p1321_p13, %p1315_p12 }
 0x2c7   : > { %1325 = shalt.err (!%p1322_p1)
}
 0x2c8   : > { %1075 = dma.vmem_to_hbm [thread:$0]  (%p1095_p11), %s892_s29, 256, %s1741_s5, [#allocation4]  }
 0x2c9   : > { %1365 = dma.done.wait (%p1095_p11), [#allocation4], 256  }
 0x2ca   : > { %1367 = vsyncadd (%p1095_p11), [#allocation4], 4294967040 }
 0x2cb PF: > { %p20_p7 = scmp.ge.s32.totalorder %s1446_s22, 4   ;;  %s1757_s18 = smov %s1374_s19 }
 0x2cc   : > { %s1758_s19 = smov %s1378_s20  ;;  %s1759_s20 = smov %s1456_s25 }
 0x2cd   : > { %s1760_s21 = smov %s1446_s22  ;;  %22 = sbr.rel (!%p20_p7) target bundleno = 7 (0x7), region = 114 }
 0x2d2   :  { %904 = vsyncpa [#allocation3], 1 }
 0x2d3   :  { %906 = vsyncpa [#allocation3 + $0x1], 1 }
 0x2d4   :  { %907 = vsyncpa [#allocation6], 1 }
 0x2d5   :  { %909 = vsyncpa [#allocation6 + $0x1], 1 }
 0x2d6   :  { %910 = vsyncpa [#allocation9], 1 }
 0x2d7   :  { %912 = vsyncpa [#allocation9 + $0x1], 1 }
 0x2d8   :  { %913 = vsyncpa [#allocation4], 1 }
 0x2d9   :  { %915 = vsyncpa [#allocation4 + $0x1], 1 }

</bundles_post_ra>
